<compile_context>
chip_gen: v7x
topology: tpu7x:2x2x1
jax: 0.10.0
libtpu: 0.0.40
codegen_flags: <defaults>
</compile_context>

<pallas_src>
import functools

import jax
import jax.numpy as jnp
import numpy as np
from jax.experimental import pallas as pl
from jax.experimental.pallas import tpu as pltpu

HIDDEN = 128
_MAX_TILE_B = 256  # M-tile of 256 keeps the 256-wide v6e/v7x MXU full.


def _mlp_kernel(x_ref, w1_ref, b1_ref, w2_ref, b2_ref, w3_ref, b3_ref,
                w4_ref, b4_ref, out_ref):
    """Fused 4-layer MLP (3x Linear+ReLU, 1x Linear) on one batch tile.

    Matmuls run on the MXU in the weight dtype (f32 or bf16) with f32
    accumulation; bias add + ReLU stay in f32 on the VPU.
    """
    cdt = w1_ref.dtype
    x = x_ref[...].astype(cdt)

    h = jnp.dot(x, w1_ref[...], preferred_element_type=jnp.float32)
    h = jnp.maximum(h + b1_ref[...], 0.0)

    h = jnp.dot(h.astype(cdt), w2_ref[...], preferred_element_type=jnp.float32)
    h = jnp.maximum(h + b2_ref[...], 0.0)

    h = jnp.dot(h.astype(cdt), w3_ref[...], preferred_element_type=jnp.float32)
    h = jnp.maximum(h + b3_ref[...], 0.0)

    h = jnp.dot(h.astype(cdt), w4_ref[...], preferred_element_type=jnp.float32)
    out_ref[...] = (h + b4_ref[...]).astype(out_ref.dtype)


def prepare_params(params, compute_dtype=jnp.float32):
    """One-time prep of constant params for the kernel (done outside the
    jitted forward so the per-call path has zero padding/reshape work).

    Returns (prepped_params, out_dim). Weights end up as:
      w1: (in_dim, 128)   w2/w3: (128, 128)   w4: (128, pad_out)
    Biases are (1, 128) / (1, pad_out) in f32 (bias add happens in f32).
    pad_out is out_dim rounded up to 128 so output stores are lane-dense.
    """
    out_dim = int(params["w4"].shape[1])
    pad_out = max(HIDDEN, ((out_dim + 127) // 128) * 128)

    w4_p = jnp.zeros((HIDDEN, pad_out), compute_dtype).at[:, :out_dim].set(
        params["w4"].astype(compute_dtype))
    b4_p = jnp.zeros((1, pad_out), jnp.float32).at[:, :out_dim].set(
        params["b4"].reshape(1, -1).astype(jnp.float32))

    prepped = {
        "w1": params["w1"].astype(compute_dtype),
        "b1": params["b1"].reshape(1, HIDDEN).astype(jnp.float32),
        "w2": params["w2"].astype(compute_dtype),
        "b2": params["b2"].reshape(1, HIDDEN).astype(jnp.float32),
        "w3": params["w3"].astype(compute_dtype),
        "b3": params["b3"].reshape(1, HIDDEN).astype(jnp.float32),
        "w4": w4_p,
        "b4": b4_p,
    }
    return prepped, out_dim


@functools.partial(jax.jit, static_argnames=("out_dim",))
def net_forward(obs, prepped, *, out_dim):
    """Forward pass of Net.

    obs:     (batch, *state_shape) float32
    prepped: output of prepare_params (pre-padded weights/biases).
    Returns logits of shape (batch, out_dim).
    """
    batch = obs.shape[0]
    x = obs.reshape(batch, -1).astype(jnp.float32)
    in_dim = x.shape[1]
    pad_out = prepped["w4"].shape[1]

    # Batch tiling: whole (8-rounded) batch in one tile when small, else
    # 256-row tiles so the grid pipelines x/out DMA against MXU work.
    if batch >= _MAX_TILE_B:
        tile_b = _MAX_TILE_B
    else:
        tile_b = ((batch + 7) // 8) * 8
    n_tiles = (batch + tile_b - 1) // tile_b
    pad_b = n_tiles * tile_b
    if pad_b != batch:
        # Only the batch (sublane) dim is padded; the feature dim stays at
        # in_dim (full-extent last dim in the BlockSpec), avoiding the 32x
        # lane inflation of the input DMA.
        x = jnp.zeros((pad_b, in_dim), jnp.float32).at[:batch].set(x)

    # Weights/biases: constant index_map -> fetched once, VMEM-resident.
    resident = lambda arr: pl.BlockSpec(arr.shape, lambda i: (0, 0))

    logits_p = pl.pallas_call(
        _mlp_kernel,
        out_shape=jax.ShapeDtypeStruct((pad_b, pad_out), jnp.float32),
        grid=(n_tiles,),
        in_specs=[
            pl.BlockSpec((tile_b, in_dim), lambda i: (i, 0)),
            resident(prepped["w1"]), resident(prepped["b1"]),
            resident(prepped["w2"]), resident(prepped["b2"]),
            resident(prepped["w3"]), resident(prepped["b3"]),
            resident(prepped["w4"]), resident(prepped["b4"]),
        ],
        out_specs=pl.BlockSpec((tile_b, pad_out), lambda i: (i, 0)),
        compiler_params=pltpu.CompilerParams(
            dimension_semantics=("parallel",)),
    )(x, prepped["w1"], prepped["b1"], prepped["w2"], prepped["b2"],
      prepped["w3"], prepped["b3"], prepped["w4"], prepped["b4"])

    return logits_p[:batch, :out_dim]


def init_params(key, state_shape, action_shape):
    """Deterministic PyTorch-nn.Linear-style (uniform) init.

    Weights stored as (in_features, out_features)."""
    in_dim = int(np.prod(state_shape))
    out_dim = int(np.prod(action_shape))
    dims = [(in_dim, HIDDEN), (HIDDEN, HIDDEN), (HIDDEN, HIDDEN), (HIDDEN, out_dim)]
    params = {}
    for i, (fan_in, fan_out) in enumerate(dims, start=1):
        key, kw, kb = jax.random.split(key, 3)
        bound = 1.0 / np.sqrt(fan_in)
        params[f"w{i}"] = jax.random.uniform(
            kw, (fan_in, fan_out), jnp.float32, -bound, bound)
        params[f"b{i}"] = jax.random.uniform(
            kb, (fan_out,), jnp.float32, -bound, bound)
    return params


def net_forward_ref(obs, params):
    """Pure-JAX reference (mirrors the PyTorch forward)."""
    x = obs.reshape(obs.shape[0], -1).astype(jnp.float32)
    h = jnp.maximum(x @ params["w1"] + params["b1"], 0.0)
    h = jnp.maximum(h @ params["w2"] + params["b2"], 0.0)
    h = jnp.maximum(h @ params["w3"] + params["b3"], 0.0)
    return h @ params["w4"] + params["b4"]


if __name__ == "__main__":
    key = jax.random.PRNGKey(0)
    state_shape = (4,)      # e.g. CartPole-like observation
    action_shape = (2,)     # discrete actions

    kp, kx1, kx2 = jax.random.split(key, 3)
    params = init_params(kp, state_shape, action_shape)
    prepped, out_dim = prepare_params(params)   # one-time, outside the forward

    # Small RL-style batch (single tile, grid of 1).
    obs_small = jax.random.normal(kx1, (2,) + state_shape, jnp.float32)
    logits_small = jax.block_until_ready(
        net_forward(obs_small, prepped, out_dim=out_dim))
    np.testing.assert_allclose(np.asarray(logits_small),
                               np.asarray(net_forward_ref(obs_small, params)),
                               rtol=1e-5, atol=1e-5)
    assert logits_small.shape == (2, int(np.prod(action_shape)))

    # Larger batch exercising the multi-step pipelined grid (2 x 256-row tiles).
    obs_big = jax.random.normal(kx2, (300,) + state_shape, jnp.float32)
    logits_big = jax.block_until_ready(
        net_forward(obs_big, prepped, out_dim=out_dim))
    np.testing.assert_allclose(np.asarray(logits_big),
                               np.asarray(net_forward_ref(obs_big, params)),
                               rtol=1e-5, atol=1e-5)
    assert logits_big.shape == (300, int(np.prod(action_shape)))

    # state passthrough (Net.forward returns (logits, state)); state=None here.
    state = None
    print("KERNEL_OK")
</pallas_src>

<mosaic_0001>
module attributes {stable_mosaic.version = 11 : i64} {
  func.func @_mlp_kernel(%arg0: i32, %arg1: memref<8x4xf32, #tpu.memory_space<vmem>>, %arg2: memref<4x128xf32, #tpu.memory_space<vmem>>, %arg3: memref<1x128xf32, #tpu.memory_space<vmem>>, %arg4: memref<128x128xf32, #tpu.memory_space<vmem>>, %arg5: memref<1x128xf32, #tpu.memory_space<vmem>>, %arg6: memref<128x128xf32, #tpu.memory_space<vmem>>, %arg7: memref<1x128xf32, #tpu.memory_space<vmem>>, %arg8: memref<128x128xf32, #tpu.memory_space<vmem>>, %arg9: memref<1x128xf32, #tpu.memory_space<vmem>>, %arg10: memref<8x128xf32, #tpu.memory_space<vmem>>) attributes {dimension_semantics = [#tpu.dimension_semantics<parallel>], iteration_bounds = array<i64: 1>, scalar_prefetch = 0 : i64, scratch_operands = 0 : i64, tpu.core_type = #tpu.core_type<tc>, window_params = [{transform_indices = @transform_0, window_bounds = array<i64: 8, 4>}, {pipeline_mode = #tpu.pipeline_mode<synchronous>, transform_indices = @transform_1, window_bounds = array<i64: 4, 128>}, {pipeline_mode = #tpu.pipeline_mode<synchronous>, transform_indices = @transform_2, window_bounds = array<i64: 1, 128>}, {pipeline_mode = #tpu.pipeline_mode<synchronous>, transform_indices = @transform_3, window_bounds = array<i64: 128, 128>}, {pipeline_mode = #tpu.pipeline_mode<synchronous>, transform_indices = @transform_4, window_bounds = array<i64: 1, 128>}, {pipeline_mode = #tpu.pipeline_mode<synchronous>, transform_indices = @transform_5, window_bounds = array<i64: 128, 128>}, {pipeline_mode = #tpu.pipeline_mode<synchronous>, transform_indices = @transform_6, window_bounds = array<i64: 1, 128>}, {pipeline_mode = #tpu.pipeline_mode<synchronous>, transform_indices = @transform_7, window_bounds = array<i64: 128, 128>}, {pipeline_mode = #tpu.pipeline_mode<synchronous>, transform_indices = @transform_8, window_bounds = array<i64: 1, 128>}, {transform_indices = @transform_9, window_bounds = array<i64: 8, 128>}]} {
    %c0 = arith.constant 0 : index
    %c0_0 = arith.constant 0 : index
    %0 = vector.load %arg1[%c0, %c0_0] : memref<8x4xf32, #tpu.memory_space<vmem>>, vector<8x4xf32>
    %c0_1 = arith.constant 0 : index
    %c0_2 = arith.constant 0 : index
    %1 = vector.load %arg2[%c0_1, %c0_2] : memref<4x128xf32, #tpu.memory_space<vmem>>, vector<4x128xf32>
    %cst = arith.constant dense<0.000000e+00> : vector<8x128xf32>
    %2 = tpu.matmul %0, %1, %cst {dimension_numbers = #tpu.dot_dimension_numbers<[1], [0], [0], [1], [0, 0, 1, 1], [], []>} : vector<8x4xf32>, vector<4x128xf32>, vector<8x128xf32> -> vector<8x128xf32>
    %c0_3 = arith.constant 0 : index
    %c0_4 = arith.constant 0 : index
    %3 = vector.load %arg3[%c0_3, %c0_4] : memref<1x128xf32, #tpu.memory_space<vmem>>, vector<1x128xf32>
    %4 = vector.broadcast %3 : vector<1x128xf32> to vector<8x128xf32>
    %5 = arith.addf %2, %4 : vector<8x128xf32>
    %cst_5 = arith.constant 0.000000e+00 : f32
    %6 = vector.broadcast %cst_5 : f32 to vector<8x128xf32>
    %7 = arith.maximumf %5, %6 : vector<8x128xf32>
    %c0_6 = arith.constant 0 : index
    %c0_7 = arith.constant 0 : index
    %8 = vector.load %arg4[%c0_6, %c0_7] : memref<128x128xf32, #tpu.memory_space<vmem>>, vector<128x128xf32>
    %cst_8 = arith.constant dense<0.000000e+00> : vector<8x128xf32>
    %9 = tpu.matmul %7, %8, %cst_8 {dimension_numbers = #tpu.dot_dimension_numbers<[1], [0], [0], [1], [0, 0, 1, 1], [], []>} : vector<8x128xf32>, vector<128x128xf32>, vector<8x128xf32> -> vector<8x128xf32>
    %c0_9 = arith.constant 0 : index
    %c0_10 = arith.constant 0 : index
    %10 = vector.load %arg5[%c0_9, %c0_10] : memref<1x128xf32, #tpu.memory_space<vmem>>, vector<1x128xf32>
    %11 = vector.broadcast %10 : vector<1x128xf32> to vector<8x128xf32>
    %12 = arith.addf %9, %11 : vector<8x128xf32>
    %cst_11 = arith.constant 0.000000e+00 : f32
    %13 = vector.broadcast %cst_11 : f32 to vector<8x128xf32>
    %14 = arith.maximumf %12, %13 : vector<8x128xf32>
    %c0_12 = arith.constant 0 : index
    %c0_13 = arith.constant 0 : index
    %15 = vector.load %arg6[%c0_12, %c0_13] : memref<128x128xf32, #tpu.memory_space<vmem>>, vector<128x128xf32>
    %cst_14 = arith.constant dense<0.000000e+00> : vector<8x128xf32>
    %16 = tpu.matmul %14, %15, %cst_14 {dimension_numbers = #tpu.dot_dimension_numbers<[1], [0], [0], [1], [0, 0, 1, 1], [], []>} : vector<8x128xf32>, vector<128x128xf32>, vector<8x128xf32> -> vector<8x128xf32>
    %c0_15 = arith.constant 0 : index
    %c0_16 = arith.constant 0 : index
    %17 = vector.load %arg7[%c0_15, %c0_16] : memref<1x128xf32, #tpu.memory_space<vmem>>, vector<1x128xf32>
    %18 = vector.broadcast %17 : vector<1x128xf32> to vector<8x128xf32>
    %19 = arith.addf %16, %18 : vector<8x128xf32>
    %cst_17 = arith.constant 0.000000e+00 : f32
    %20 = vector.broadcast %cst_17 : f32 to vector<8x128xf32>
    %21 = arith.maximumf %19, %20 : vector<8x128xf32>
    %c0_18 = arith.constant 0 : index
    %c0_19 = arith.constant 0 : index
    %22 = vector.load %arg8[%c0_18, %c0_19] : memref<128x128xf32, #tpu.memory_space<vmem>>, vector<128x128xf32>
    %cst_20 = arith.constant dense<0.000000e+00> : vector<8x128xf32>
    %23 = tpu.matmul %21, %22, %cst_20 {dimension_numbers = #tpu.dot_dimension_numbers<[1], [0], [0], [1], [0, 0, 1, 1], [], []>} : vector<8x128xf32>, vector<128x128xf32>, vector<8x128xf32> -> vector<8x128xf32>
    %c0_21 = arith.constant 0 : index
    %c0_22 = arith.constant 0 : index
    %24 = vector.load %arg9[%c0_21, %c0_22] : memref<1x128xf32, #tpu.memory_space<vmem>>, vector<1x128xf32>
    %25 = vector.broadcast %24 : vector<1x128xf32> to vector<8x128xf32>
    %26 = arith.addf %23, %25 : vector<8x128xf32>
    %c0_23 = arith.constant 0 : index
    %c0_24 = arith.constant 0 : index
    %27 = vector.load %arg10[%c0_23, %c0_24] : memref<8x128xf32, #tpu.memory_space<vmem>>, vector<8x128xf32>
    tpu.vector_store %arg10[%c0_23, %c0_24], %26 {strides = array<i32>} : memref<8x128xf32, #tpu.memory_space<vmem>>, vector<8x128xf32>,
    return
  }
  func.func @transform_0(%arg0: i32) -> (i32, i32) {
    %c0_i32 = arith.constant 0 : i32
    %c0_i32_0 = arith.constant 0 : i32
    return %arg0, %c0_i32 : i32, i32
  }
  func.func @transform_1(%arg0: i32) -> (i32, i32) {
    %c0_i32 = arith.constant 0 : i32
    %c0_i32_0 = arith.constant 0 : i32
    %c0_i32_1 = arith.constant 0 : i32
    return %c0_i32, %c0_i32_0 : i32, i32
  }
  func.func @transform_2(%arg0: i32) -> (i32, i32) {
    %c0_i32 = arith.constant 0 : i32
    %c0_i32_0 = arith.constant 0 : i32
    %c0_i32_1 = arith.constant 0 : i32
    return %c0_i32, %c0_i32_0 : i32, i32
  }
  func.func @transform_3(%arg0: i32) -> (i32, i32) {
    %c0_i32 = arith.constant 0 : i32
    %c0_i32_0 = arith.constant 0 : i32
    %c0_i32_1 = arith.constant 0 : i32
    return %c0_i32, %c0_i32_0 : i32, i32
  }
  func.func @transform_4(%arg0: i32) -> (i32, i32) {
    %c0_i32 = arith.constant 0 : i32
    %c0_i32_0 = arith.constant 0 : i32
    %c0_i32_1 = arith.constant 0 : i32
    return %c0_i32, %c0_i32_0 : i32, i32
  }
  func.func @transform_5(%arg0: i32) -> (i32, i32) {
    %c0_i32 = arith.constant 0 : i32
    %c0_i32_0 = arith.constant 0 : i32
    %c0_i32_1 = arith.constant 0 : i32
    return %c0_i32, %c0_i32_0 : i32, i32
  }
  func.func @transform_6(%arg0: i32) -> (i32, i32) {
    %c0_i32 = arith.constant 0 : i32
    %c0_i32_0 = arith.constant 0 : i32
    %c0_i32_1 = arith.constant 0 : i32
    return %c0_i32, %c0_i32_0 : i32, i32
  }
  func.func @transform_7(%arg0: i32) -> (i32, i32) {
    %c0_i32 = arith.constant 0 : i32
    %c0_i32_0 = arith.constant 0 : i32
    %c0_i32_1 = arith.constant 0 : i32
    return %c0_i32, %c0_i32_0 : i32, i32
  }
  func.func @transform_8(%arg0: i32) -> (i32, i32) {
    %c0_i32 = arith.constant 0 : i32
    %c0_i32_0 = arith.constant 0 : i32
    %c0_i32_1 = arith.constant 0 : i32
    return %c0_i32, %c0_i32_0 : i32, i32
  }
  func.func @transform_9(%arg0: i32) -> (i32, i32) {
    %c0_i32 = arith.constant 0 : i32
    %c0_i32_0 = arith.constant 0 : i32
    return %arg0, %c0_i32 : i32, i32
  }
}

</mosaic_0001>

<bundles_post_ra>
// kernel: net_forward.1
= control target key start
LH: loop header
LB: loop body
LE: loop exit
PB: predicated region body
PF: predicated region fallthrough
CT: control target
= control target key end

     0   :  { %14 = vsyncpa [#allocation3], 0  ;;  %s932_s0 = inlined_call_operand.vmem [shape: f32[8,4], index: 0, kind: input, shape index: {}]   ;;  %s933_s1 = inlined_call_operand.vmem [shape: f32[4,128], index: 1, kind: input, shape index: {}]   ;;  %s934_s2 = inlined_call_operand.vmem [shape: f32[1,128], index: 2, kind: input, shape index: {}]   ;;  %s935_s3 = inlined_call_operand.hbm [shape: f32[128,128], index: 3, kind: input, shape index: {}]   ;;  %s936_s4 = inlined_call_operand.vmem [shape: f32[1,128], index: 4, kind: input, shape index: {}]   ;;  %s937_s5 = inlined_call_operand.hbm [shape: f32[128,128], index: 5, kind: input, shape index: {}]   ;;  %s938_s6 = inlined_call_operand.vmem [shape: f32[1,128], index: 6, kind: input, shape index: {}]   ;;  %s939_s7 = inlined_call_operand.hbm [shape: f32[128,128], index: 7, kind: input, shape index: {}]   ;;  %s940_s8 = inlined_call_operand.vmem [shape: f32[1,128], index: 8, kind: input, shape index: {}]   ;;  %s941_s9 = inlined_call_operand.vmem [shape: f32[8,128], index: 9, kind: output, shape index: {}]  }
   0x1   :  { %15 = vsyncpa [#allocation5], 0  ;;  %s768_s30 = smov [#allocation4]   ;;  %s769_s11 = smov [#allocation2]  }
   0x2   :  { %s41_s10 = sshll.u32 %s768_s30, 4  ;;  %s27_s12 = sshll.u32 %s769_s11, 4  ;;  %s42_s10 = int_to_ptr.vmem [resolvable:$true] %s41_s10  ;;  %s826_s12 = int_to_ptr.vmem [resolvable:$true] %s27_s12 }
   0x3   :  { %s698_s15 = scalar_lea.hbm %s937_s5, 2048 }
   0x4   :  { %p699_p0 = scmp.ne.s32.totalorder %s937_s5, %s698_s15  ;;  %p702_p1 = scmp.lt.u32.totalorder %s698_s15, %s937_s5 }
   0x6   :  { %p704_p2 = pnand %p702_p1, %p699_p0 }
   0x8   :  { %707 = shalt.err (!%p704_p2)
}
   0x9   :  { %s708_s20 = scalar_lea.vmem %s42_s10, 2048  ;;  %p713_p4 = scmp.lt.s32.totalorder %s42_s10, %s42_s10 }
   0xa   :  { %p709_p3 = scmp.ne.s32.totalorder %s42_s10, %s708_s20  ;;  %p714_p5 = scmp.lt.s32.totalorder %s708_s20, %s708_s20 }
   0xc   :  { %p715_p6 = por %p714_p5, %p713_p4 }
   0xe   :  { %p716_p7 = pnand %p715_p6, %p709_p3 }
  0x10   :  { %719 = shalt.err (!%p716_p7)
}
  0x11   :  { %s770_s21 = smov 128   ;;  %s771_s22 = smov 8  }
  0x12   :  { %47 = dma.hbm_to_vmem [thread:$0]  %s937_s5, 2048, %s42_s10, [#allocation5], %s770_s21, %s770_s21, %s771_s22  }
  0x13   :  { %s720_s27 = scalar_lea.hbm %s935_s3, 2048 }
  0x14   :  { %p721_p8 = scmp.ne.s32.totalorder %s935_s3, %s720_s27  ;;  %p724_p9 = scmp.lt.u32.totalorder %s720_s27, %s935_s3 }
  0x16   :  { %p726_p10 = pnand %p724_p9, %p721_p8 }
  0x18   :  { %729 = shalt.err (!%p726_p10)
}
  0x19   :  { %s730_s13 = scalar_lea.vmem %s826_s12, 2048  ;;  %p735_p12 = scmp.lt.s32.totalorder %s826_s12, %s826_s12 }
  0x1a   :  { %p731_p11 = scmp.ne.s32.totalorder %s826_s12, %s730_s13  ;;  %p736_p13 = scmp.lt.s32.totalorder %s730_s13, %s730_s13 }
  0x1c   :  { %p737_p0 = por %p736_p13, %p735_p12 }
  0x1e   :  { %p738_p1 = pnand %p737_p0, %p731_p11 }
  0x20   :  { %741 = shalt.err (!%p738_p1)
}
  0x21   :  { %33 = dma.hbm_to_vmem [thread:$0]  %s935_s3, 2048, %s826_s12, [#allocation3], %s770_s21, %s770_s21, %s771_s22  }
  0x22   :  { %s772_s14 = smov [#allocation6]   ;;  %s742_s18 = scalar_lea.hbm %s939_s7, 2048 }
  0x23   :  { %s55_s15 = sshll.u32 %s772_s14, 4  ;;  %p743_p2 = scmp.ne.s32.totalorder %s939_s7, %s742_s18  ;;  %s56_s15 = int_to_ptr.vmem [resolvable:$true] %s55_s15 }
  0x24   :  { %p746_p3 = scmp.lt.u32.totalorder %s742_s18, %s939_s7 }
  0x26   :  { %p748_p4 = pnand %p746_p3, %p743_p2 }
  0x28   :  { %751 = shalt.err (!%p748_p4)
}
  0x29   :  { %s752_s25 = scalar_lea.vmem %s56_s15, 2048  ;;  %p757_p6 = scmp.lt.s32.totalorder %s56_s15, %s56_s15 }
  0x2a   :  { %p753_p5 = scmp.ne.s32.totalorder %s56_s15, %s752_s25  ;;  %p758_p7 = scmp.lt.s32.totalorder %s752_s25, %s752_s25 }
  0x2c   :  { %p759_p8 = por %p758_p7, %p757_p6 }
  0x2e   :  { %p760_p9 = pnand %p759_p8, %p753_p5 }
  0x30   :  { %763 = shalt.err (!%p760_p9)
}
  0x31   :  { %61 = dma.hbm_to_vmem [thread:$0]  %s939_s7, 2048, %s56_s15, [#allocation5], %s770_s21, %s770_s21, %s771_s22  }
  0x32   :  { %764 = dma.done.wait [#allocation3], 2048  }
  0x33   :  { %765 = vsyncadd [#allocation3], 4294965248 }
  0x34   :  { %766 = dma.done.wait [#allocation5], 4096  }
  0x35   :  { %767 = vsyncadd [#allocation5], 4294963200  ;;  %v773_v0 = vmov 0.0   ;;  %vm774_vm0 = vmmov 0   ;;  %v775_v1 = vmov 0.0|0.0   ;;  %vm86_vm1 = vcmask 1043456  }
  0x36   :  { %508 = vmatprep.subr.mxu0 %v773_v0  ;;  %510 = vmatprep.mubr.msk.f32.mxu0 %vm774_vm0, %v773_v0  ;;  %vm82_vm2 = vcmask 31744   ;;  %v74_v2 = vld [vmem:[%s933_s1] sm:$0xf]  ;;  %v162_v5 = vld [vmem:[#allocation2 + $0x8] sm:$0xff]  ;;  %v163_v6 = vld [vmem:[#allocation2 + $0x10] sm:$0xff] }
  0x37   :  { %618 = vmatprep.subr.bf16.mxu1 %v775_v1  ;;  %545 = vmatprep.mubr.msk.f32.mxu1 %vm774_vm0, %v773_v0  ;;  %v73_v3 = vld [vmem:[%s932_s0] sm:$0xff]  ;;  %v164_v7 = vld [vmem:[#allocation2 + $0x18] sm:$0xff]  ;;  %v166_v11 = vld [vmem:[#allocation2 + $0x28] sm:$0xff] }
  0x38   :  { %v161_v4 = vld [vmem:[#allocation2] sm:$0xff]  ;;  %509 = vmatpush3.msk.msra.mxu0 %vm86_vm1, %v74_v2  ;;  %v622_v9 = vpack.c.bf16 %v164_v7, %v163_v6  ;;  %v167_v13 = vld [vmem:[#allocation2 + $0x30] sm:$0xff]  ;;  %v168_v14 = vld [vmem:[#allocation2 + $0x38] sm:$0xff] }
  0x39   :  { %511 = vmatmul.mubr.msk.f32.vlgmr.msra.gmra.mrb[0].mxu0 %vm82_vm2, %v73_v3  ;;  %v619_v8 = vpack.c.bf16 %v162_v5, %v161_v4  ;;  %642 = vmatprep.subr.bf16.mxu0 %v775_v1  ;;  %v165_v10 = vld [vmem:[#allocation2 + $0x20] sm:$0xff]  ;;  %v628_v15 = vpack.c.bf16 %v168_v14, %v167_v13  ;;  %v170_v17 = vld [vmem:[#allocation2 + $0x48] sm:$0xff]  ;;  %v171_v19 = vld [vmem:[#allocation2 + $0x50] sm:$0xff] }
  0x3a   :  { %580 = vmatprep.mubr.msk.f32.mxu0 %vm774_vm0, %v773_v0  ;;  %v625_v12 = vpack.c.bf16 %v166_v11, %v165_v10  ;;  %v169_v16 = vld [vmem:[#allocation2 + $0x40] sm:$0xff]  ;;  %v172_v20 = vld [vmem:[#allocation2 + $0x58] sm:$0xff]  ;;  %v174_v23 = vld [vmem:[#allocation2 + $0x68] sm:$0xff] }
  0x3b   :  { %620 = vmatpush3.bf16.msra.mxu1 %v619_v8  ;;  %v631_v18 = vpack.c.bf16 %v170_v17, %v169_v16  ;;  %v634_v21 = vpack.c.bf16 %v172_v20, %v171_v19  ;;  %v173_v22 = vld [vmem:[#allocation2 + $0x60] sm:$0xff]  ;;  %v175_v25 = vld [vmem:[#allocation2 + $0x70] sm:$0xff]  ;;  %v176_v26 = vld [vmem:[#allocation2 + $0x78] sm:$0xff] }
  0x3c   :  { %621 = vmatprep.subr.bf16.mxu1 %v775_v1  ;;  %v637_v24 = vpack.c.bf16 %v174_v23, %v173_v22  ;;  %v640_v27 = vpack.c.bf16 %v176_v26, %v175_v25  ;;  %v255_v28 = vld [vmem:[#allocation4] sm:$0xff]  ;;  %v256_v29 = vld [vmem:[#allocation4 + $0x8] sm:$0xff]  ;;  %v257_v30 = vld [vmem:[#allocation4 + $0x10] sm:$0xff] }
  0x3d   :  { %v643_v31 = vpack.c.bf16 %v256_v29, %v255_v28  ;;  %v258_v32 = vld [vmem:[#allocation4 + $0x18] sm:$0xff]  ;;  %v259_v34 = vld [vmem:[#allocation4 + $0x20] sm:$0xff]  ;;  %v260_v35 = vld [vmem:[#allocation4 + $0x28] sm:$0xff] }
  0x3e   :  { %v646_v33 = vpack.c.bf16 %v258_v32, %v257_v30  ;;  %v649_v36 = vpack.c.bf16 %v260_v35, %v259_v34  ;;  %v261_v37 = vld [vmem:[#allocation4 + $0x30] sm:$0xff]  ;;  %v262_v38 = vld [vmem:[#allocation4 + $0x38] sm:$0xff]  ;;  %v263_v40 = vld [vmem:[#allocation4 + $0x40] sm:$0xff] }
  0x3f   :  { %623 = vmatpush3.bf16.msra.mxu1 %v622_v9  ;;  %644 = vmatpush3.bf16.msra.mxu0 %v643_v31  ;;  %v652_v39 = vpack.c.bf16 %v262_v38, %v261_v37  ;;  %v264_v41 = vld [vmem:[#allocation4 + $0x48] sm:$0xff]  ;;  %v265_v43 = vld [vmem:[#allocation4 + $0x50] sm:$0xff]  ;;  %v266_v44 = vld [vmem:[#allocation4 + $0x58] sm:$0xff] }
  0x40   :  { %624 = vmatprep.subr.bf16.mxu1 %v775_v1  ;;  %645 = vmatprep.subr.bf16.mxu0 %v775_v1  ;;  %v655_v42 = vpack.c.bf16 %v264_v41, %v263_v40  ;;  %v658_v45 = vpack.c.bf16 %v266_v44, %v265_v43  ;;  %v267_v46 = vld [vmem:[#allocation4 + $0x60] sm:$0xff]  ;;  %v268_v47 = vld [vmem:[#allocation4 + $0x68] sm:$0xff]  ;;  %v269_v54 = vld [vmem:[#allocation4 + $0x70] sm:$0xff] }
  0x41   :  { %v661_v48 = vpack.c.bf16 %v268_v47, %v267_v46  ;;  %v449_v49 = vld [vmem:[%s934_s2] ss:$0 sm:$0xff]  ;;  %v270_v55 = vld [vmem:[#allocation4 + $0x78] sm:$0xff]  ;;  %v350_v58 = vld [vmem:[#allocation6 + $0x8] sm:$0xff] }
  0x42   :  { %v664_v56 = vpack.c.bf16 %v270_v55, %v269_v54  ;;  %v349_v57 = vld [vmem:[#allocation6] sm:$0xff]  ;;  %v351_v59 = vld [vmem:[#allocation6 + $0x10] sm:$0xff]  ;;  %v352_v61 = vld [vmem:[#allocation6 + $0x18] sm:$0xff] }
  0x43   :  { %626 = vmatpush3.bf16.msra.mxu1 %v625_v12  ;;  %647 = vmatpush3.bf16.msra.mxu0 %v646_v33  ;;  %v667_v60 = vpack.c.bf16 %v350_v58, %v349_v57  ;;  %v670_v62 = vpack.c.bf16 %v352_v61, %v351_v59  ;;  %v353_v63 = vld [vmem:[#allocation6 + $0x20] sm:$0xff]  ;;  %v354_v2 = vld [vmem:[#allocation6 + $0x28] sm:$0xff]  ;;  %v356_v4 = vld [vmem:[#allocation6 + $0x38] sm:$0xff] }
  0x44   :  { %627 = vmatprep.subr.bf16.mxu1 %v775_v1  ;;  %648 = vmatprep.subr.bf16.mxu0 %v775_v1  ;;  %v673_v3 = vpack.c.bf16 %v354_v2, %v353_v63  ;;  %v357_v6 = vld [vmem:[#allocation6 + $0x40] sm:$0xff]  ;;  %v358_v7 = vld [vmem:[#allocation6 + $0x48] sm:$0xff]  ;;  %v359_v9 = vld [vmem:[#allocation6 + $0x50] sm:$0xff] }
  0x45   :  { %v679_v8 = vpack.c.bf16 %v358_v7, %v357_v6  ;;  %v360_v10 = vld [vmem:[#allocation6 + $0x58] sm:$0xff]  ;;  %v361_v12 = vld [vmem:[#allocation6 + $0x60] sm:$0xff]  ;;  %v362_v13 = vld [vmem:[#allocation6 + $0x68] sm:$0xff] }
  0x46   :  { %v682_v11 = vpack.c.bf16 %v360_v10, %v359_v9  ;;  %v685_v14 = vpack.c.bf16 %v362_v13, %v361_v12  ;;  %v363_v20 = vld [vmem:[#allocation6 + $0x70] sm:$0xff]  ;;  %v453_v23 = vld [vmem:[%s938_s6] ss:$0 sm:$0xff] }
  0x47   :  { %629 = vmatpush3.bf16.msra.mxu1 %v628_v15  ;;  %650 = vmatpush3.bf16.msra.mxu0 %v649_v36  ;;  %v452_v15 = vld [vmem:[%s936_s4] ss:$0 sm:$0xff] }
  0x48   :  { %630 = vmatprep.subr.bf16.mxu1 %v775_v1  ;;  %651 = vmatprep.subr.bf16.mxu0 %v775_v1 }
  0x4b   :  { %632 = vmatpush3.bf16.msra.mxu1 %v631_v18  ;;  %653 = vmatpush3.bf16.msra.mxu0 %v652_v39 }
  0x4c   :  { %633 = vmatprep.subr.bf16.mxu1 %v775_v1  ;;  %654 = vmatprep.subr.bf16.mxu0 %v775_v1 }
  0x4f   :  { %635 = vmatpush3.bf16.msra.mxu1 %v634_v21  ;;  %656 = vmatpush3.bf16.msra.mxu0 %v655_v42  ;;  %v364_v21 = vld [vmem:[#allocation6 + $0x78] sm:$0xff] }
  0x50   :  { %636 = vmatprep.subr.bf16.mxu1 %v775_v1  ;;  %657 = vmatprep.subr.bf16.mxu0 %v775_v1  ;;  %v688_v22 = vpack.c.bf16 %v364_v21, %v363_v20 }
  0x53   :  { %638 = vmatpush3.bf16.msra.mxu1 %v637_v24  ;;  %659 = vmatpush3.bf16.msra.mxu0 %v658_v45 }
  0x54   :  { %639 = vmatprep.subr.bf16.mxu1 %v775_v1  ;;  %660 = vmatprep.subr.bf16.mxu0 %v775_v1 }
  0x57   :  { %641 = vmatpush3.bf16.msra.mxu1 %v640_v27  ;;  %662 = vmatpush3.bf16.msra.mxu0 %v661_v48  ;;  %v454_v27 = vld [vmem:[%s940_s8] ss:$0 sm:$0xff] }
  0x58   :  { %666 = vmatprep.subr.bf16.mxu1 %v775_v1  ;;  %663 = vmatprep.subr.bf16.mxu0 %v775_v1 }
  0x5b   :  { %665 = vmatpush3.bf16.msra.mxu0 %v664_v56 }
 0x10c   :  { %v156_v50 = vpop.f32.mrb[0].mxu0 }
 0x10d   :  { %v157_v51 = vadd.f32 %v449_v49, %v156_v50  ;;  %v512_v52 = vpop.f32.mrb[1].mxu0 }
 0x10f   :  { %v160_v53 = vmax.f32 %v157_v51, 0.0 }
 0x111   :  { %546 = vmatmul.mubr.f32.vlgmr.msra.gmra.mrb[0].mxu1 %v160_v53 }
 0x112   :  { %615 = vmatprep.mubr.msk.f32.mxu1 %vm774_vm0, %v773_v0  ;;  %668 = vmatpush3.bf16.msra.mxu1 %v667_v60  ;;  %v355_v0 = vld [vmem:[#allocation6 + $0x30] sm:$0xff] }
 0x113   :  { %669 = vmatprep.subr.bf16.mxu1 %v775_v1  ;;  %v676_v5 = vpack.c.bf16 %v356_v4, %v355_v0 }
 0x116   :  { %671 = vmatpush3.bf16.msra.mxu1 %v670_v62 }
 0x117   :  { %672 = vmatprep.subr.bf16.mxu1 %v775_v1 }
 0x11a   :  { %674 = vmatpush3.bf16.msra.mxu1 %v673_v3 }
 0x11b   :  { %675 = vmatprep.subr.bf16.mxu1 %v775_v1 }
 0x11e   :  { %677 = vmatpush3.bf16.msra.mxu1 %v676_v5 }
 0x11f   :  { %678 = vmatprep.subr.bf16.mxu1 %v775_v1 }
 0x122   :  { %680 = vmatpush3.bf16.msra.mxu1 %v679_v8 }
 0x123   :  { %681 = vmatprep.subr.bf16.mxu1 %v775_v1 }
 0x126   :  { %683 = vmatpush3.bf16.msra.mxu1 %v682_v11 }
 0x127   :  { %684 = vmatprep.subr.bf16.mxu1 %v775_v1 }
 0x12a   :  { %686 = vmatpush3.bf16.msra.mxu1 %v685_v14 }
 0x12b   :  { %687 = vmatprep.subr.bf16.mxu1 %v775_v1 }
 0x12e   :  { %689 = vmatpush3.bf16.msra.mxu1 %v688_v22 }
 0x1e4   :  { %v250_v16 = vpop.f32.mrb[0].mxu1 }
 0x1e5   :  { %v251_v17 = vadd.f32 %v452_v15, %v250_v16  ;;  %v547_v18 = vpop.f32.mrb[1].mxu1 }
 0x1e7   :  { %v254_v19 = vmax.f32 %v251_v17, 0.0 }
 0x1e9   :  { %581 = vmatmul.mubr.f32.vlgmr.msra.gmra.mrb[2].mxu0 %v254_v19 }
 0x2bc   :  { %v344_v24 = vpop.f32.mrb[2].mxu0 }
 0x2bd   :  { %v345_v25 = vadd.f32 %v453_v23, %v344_v24  ;;  %v582_v1 = vpop.f32.mrb[3].mxu0 }
 0x2bf   :  { %v348_v26 = vmax.f32 %v345_v25, 0.0 }
 0x2c1   :  { %616 = vmatmul.mubr.f32.vlgmr.msra.gmra.mrb[2].mxu1 %v348_v26 }
 0x394   :  { %v438_v28 = vpop.f32.mrb[2].mxu1 }
 0x395   :  { %v439_v29 = vadd.f32 %v454_v27, %v438_v28  ;;  %v617_v30 = vpop.f32.mrb[3].mxu1 }
 0x397   :  { %442 = vst [vmem:[%s941_s9] sm:$0xff] %v439_v29 }
 0x398   :  { %447 = vsyncpa [#allocation3], 1 }
 0x399   :  { %448 = vsyncpa [#allocation5], 1 }

</bundles_post_ra>
